<compile_context>
chip_gen: v5e
topology: v5e:2x2
jax: 0.10.0
libtpu: 0.0.40
codegen_flags: <defaults>
</compile_context>

<pallas_src>
import functools

import jax
import jax.numpy as jnp
from jax.experimental import pallas as pl
from jax.experimental.pallas import tpu as pltpu


# ------------------------------------------------------------------ kernel ---
def edge_mlp_kernel(idx_ref, et_ref, w1oh_ref, w1e_ref, b1_ref,
                    w2_ref, b2_ref, gamma_ref, beta_ref, o_ref,
                    *, n_nodes, n_graphs):
    """One edge tile, fully transposed so the tile_e edges live on the 128-lane axis.

    idx_ref  : (3, tile_e) int32  rows = [receiver_node, sender_node, graph_id]
    et_ref   : (Fe, tile_e) bf16  edge_attr^T
    w1oh_ref : (L, 2N+G)   bf16   [x@W1_recv | x@W1_send | u@W1_glob]^T  (precomputed tables)
    w1e_ref  : (L, Fe)     bf16   W1_edge^T
    b1_ref   : (L, 1)      f32
    w2_ref   : (Fout, L)   bf16   W2^T
    b2/gamma/beta : (Fout, 1) f32
    o_ref    : (Fout, tile_e) bf16
    """
    f32 = jnp.float32
    cd = w1oh_ref.dtype

    idx = idx_ref[...]                                   # (3, tile_e) int32
    recv = idx[0:1, :]                                   # receiver node id (= edge_index[1])
    send = idx[1:2, :]                                   # sender   node id (= edge_index[0])
    gid = idx[2:3, :]                                    # graph id

    # Combined one-hot gather matrix: 3 ones per edge column, in disjoint row ranges
    # [0,N) receiver, [N,2N) sender, [2N,2N+G) global.  A single MXU pass against the
    # precomputed node/global->latent tables performs the whole row gather + layer-1
    # contribution of receiver/sender/global features.
    koh = 2 * n_nodes + n_graphs
    kio = jax.lax.broadcasted_iota(jnp.int32, (koh, idx.shape[1]), 0)
    hit = (kio == recv) | (kio == send + n_nodes) | (kio == gid + 2 * n_nodes)
    oh = jnp.where(hit, 1.0, 0.0).astype(cd)             # (2N+G, tile_e) bf16

    # Layer 1 (transposed): h^T = T_oh @ onehot + W1_e^T @ edge_attr^T + b1, then ReLU.
    h = jnp.dot(w1oh_ref[...], oh, preferred_element_type=f32)
    h = h + jnp.dot(w1e_ref[...], et_ref[...], preferred_element_type=f32)
    h = jnp.maximum(h + b1_ref[...], 0.0)                # (L, tile_e) f32
    h = h.astype(w2_ref.dtype)                           # bf16 for the second MXU pass

    # Layer 2: y^T = W2^T @ h^T + b2 ; activate_final ReLU.
    y = jnp.dot(w2_ref[...], h, preferred_element_type=f32) + b2_ref[...]
    y = jnp.maximum(y, 0.0)                              # (Fout, tile_e) f32

    # LayerNorm over the feature axis (= sublanes), f32; eps matches torch.nn.LayerNorm.
    mu = jnp.mean(y, axis=0, keepdims=True)
    var = jnp.mean((y - mu) * (y - mu), axis=0, keepdims=True)
    y = (y - mu) * jax.lax.rsqrt(var + 1e-5)
    o_ref[...] = (y * gamma_ref[...] + beta_ref[...]).astype(o_ref.dtype)


# ----------------------------------------------------------------- wrapper ---
def edge_mlp_pallas(idx3, edge_attr_t, w1oh_t, w1e_t, b1c, w2t, b2c, gammac, betac,
                    *, n_nodes, n_graphs, tile_e=512, out_dtype=jnp.bfloat16):
    """Fused edge-MLP over all edges, tiled along the edge (lane) axis. Returns (E, Fout)."""
    E = idx3.shape[1]
    Fe = edge_attr_t.shape[0]
    Fout = w2t.shape[0]
    E_pad = ((E + tile_e - 1) // tile_e) * tile_e
    pad = E_pad - E
    if pad:
        # Only the tiny per-edge arrays are padded (node/graph 0, zero features): the padded
        # columns compute finite values and are sliced off below.
        idx3 = jnp.pad(idx3, ((0, 0), (0, pad)))
        edge_attr_t = jnp.pad(edge_attr_t, ((0, 0), (0, pad)))

    grid = (E_pad // tile_e,)   # keep >= 2 (preferably even) steps so both v7x TCs are used

    def edge_spec(rows):        # per-edge data: edges tiled along the 128-lane axis
        return pl.BlockSpec((rows, tile_e), lambda i: (0, i))

    def full_spec(shape):       # grid-invariant weights / biases / LN params
        return pl.BlockSpec(shape, lambda i: (0, 0))

    kernel = functools.partial(edge_mlp_kernel, n_nodes=n_nodes, n_graphs=n_graphs)

    out_t = pl.pallas_call(
        kernel,
        out_shape=jax.ShapeDtypeStruct((Fout, E_pad), out_dtype),
        grid_spec=pltpu.PrefetchScalarGridSpec(
            num_scalar_prefetch=0,
            grid=grid,
            in_specs=[
                edge_spec(3),                 # [receiver, sender, graph] ids
                edge_spec(Fe),                # edge_attr^T
                full_spec(w1oh_t.shape),      # node/global -> latent projection tables
                full_spec(w1e_t.shape),       # W1 edge slice (transposed)
                full_spec(b1c.shape),
                full_spec(w2t.shape),
                full_spec(b2c.shape),
                full_spec(gammac.shape),
                full_spec(betac.shape),
            ],
            out_specs=pl.BlockSpec((Fout, tile_e), lambda i: (0, i)),
        ),
        compiler_params=pltpu.CompilerParams(
            dimension_semantics=("parallel",),        # edge tiles shard across v7x TCs
            vmem_limit_bytes=32 * 1024 * 1024),       # tiny footprint; safe on v7x (64 MiB)
    )(idx3, edge_attr_t, w1oh_t, w1e_t, b1c, w2t, b2c, gammac, betac)

    return out_t[:, :E].T                              # back to (E, Fout) for module parity


@functools.partial(jax.jit, static_argnames=("tile_e",))
def edge_model_forward(x, edge_index, edge_attr, u, batch,
                       w1, w1e_t, b1c, w2t, b2c, gammac, betac, *, tile_e=512):
    """Full EdgeModel forward: node/global precompute (XLA) + fused Pallas edge kernel."""
    f32 = jnp.float32
    cd = w1e_t.dtype
    Fn = x.shape[1]
    Fe = edge_attr.shape[1]

    row, col = edge_index[0], edge_index[1]             # sender = x[row], receiver = x[col]
    gid = batch[row]                                     # cast_globals_to_edges
    idx3 = jnp.stack([col, row, gid], axis=0).astype(jnp.int32)     # (3, E)

    # Per-NODE / per-GRAPH projection through the matching W1 slice (concat order
    # [receiver | sender | edge_attr | global]).  O(N) work in f32; the per-edge gather is
    # done in-kernel via the one-hot MXU matmul.
    t_recv = jnp.dot(x, w1[:Fn], preferred_element_type=f32)                # (N, L)
    t_send = jnp.dot(x, w1[Fn:2 * Fn], preferred_element_type=f32)          # (N, L)
    t_glob = jnp.dot(u, w1[2 * Fn + Fe:], preferred_element_type=f32)       # (G, L)
    w1oh_t = jnp.concatenate([t_recv.T, t_send.T, t_glob.T], axis=1).astype(cd)  # (L, 2N+G)

    edge_attr_t = edge_attr.T.astype(cd)                 # (Fe, E): cast + transpose fuse in XLA

    return edge_mlp_pallas(idx3, edge_attr_t, w1oh_t, w1e_t, b1c, w2t, b2c, gammac, betac,
                           n_nodes=x.shape[0], n_graphs=u.shape[0], tile_e=tile_e)


# ------------------------------------------------------------------- model ---
class EdgeModelPallas:
    """JAX/Pallas equivalent of the PyTorch EdgeModel (activate_final=True, normalize=True)."""

    def __init__(self, n_edge_feats_in, n_edge_feats_out, n_node_feats, n_global_feats,
                 latent_size=128, tile_e=512, compute_dtype=jnp.bfloat16, key=None):
        if key is None:
            key = jax.random.PRNGKey(0)
        self.tile_e = tile_e
        self.compute_dtype = compute_dtype
        self.n_node_feats = n_node_feats
        self.n_edge_feats_in = n_edge_feats_in
        self.n_edge_feats_out = n_edge_feats_out
        self.n_global_feats = n_global_feats
        self.latent_size = latent_size

        n_in = n_edge_feats_in + 2 * n_node_feats + n_global_feats
        k1, k2, k3, k4 = jax.random.split(key, 4)
        s1 = 1.0 / float(n_in) ** 0.5
        s2 = 1.0 / float(latent_size) ** 0.5

        # W1 rows in concat order [receiver | sender | edge_attr | global]; kept f32 so the
        # per-call node/global -> latent projections run in full precision.
        self.w1 = jax.random.uniform(k1, (n_in, latent_size), jnp.float32, -s1, s1)
        Fn, Fe = n_node_feats, n_edge_feats_in
        self.w1e_t = self.w1[2 * Fn:2 * Fn + Fe].T.astype(compute_dtype)     # (L, Fe)
        self.b1c = jax.random.uniform(k2, (latent_size, 1), jnp.float32, -s1, s1)
        w2 = jax.random.uniform(k3, (latent_size, n_edge_feats_out), jnp.float32, -s2, s2)
        self.w2t = w2.T.astype(compute_dtype)                                # (Fout, L)
        self.b2c = jax.random.uniform(k4, (n_edge_feats_out, 1), jnp.float32, -s2, s2)
        self.gammac = jnp.ones((n_edge_feats_out, 1), jnp.float32)           # LayerNorm weight
        self.betac = jnp.zeros((n_edge_feats_out, 1), jnp.float32)           # LayerNorm bias

    def __call__(self, x, edge_index, edge_attr, u, batch):
        return edge_model_forward(x, edge_index, edge_attr, u, batch,
                                  self.w1, self.w1e_t, self.b1c, self.w2t, self.b2c,
                                  self.gammac, self.betac, tile_e=self.tile_e)


# --------------------------------------------------------------- reference ---
def reference_forward(model, x, edge_index, edge_attr, u, batch):
    """Plain-JAX reference mirroring the kernel's bf16 parameters / casts.

    Note: this validates self-consistency with the kernel's mixed precision; a full-f32
    PyTorch EdgeModel would show the usual ~1e-2 bf16 drift relative to both.
    """
    f32 = jnp.float32
    cd = model.compute_dtype
    Fn, Fe = model.n_node_feats, model.n_edge_feats_in
    row, col = edge_index[0], edge_index[1]
    gid = batch[row]

    t_recv = jnp.dot(x, model.w1[:Fn], preferred_element_type=f32).astype(cd)
    t_send = jnp.dot(x, model.w1[Fn:2 * Fn], preferred_element_type=f32).astype(cd)
    t_glob = jnp.dot(u, model.w1[2 * Fn + Fe:], preferred_element_type=f32).astype(cd)
    e_b = edge_attr.astype(cd)

    h = (t_recv[col].astype(f32) + t_send[row].astype(f32) + t_glob[gid].astype(f32)
         + jnp.dot(e_b, model.w1e_t.T, preferred_element_type=f32)
         + model.b1c.reshape(1, -1))
    h = jnp.maximum(h, 0.0).astype(cd)
    y = jnp.dot(h, model.w2t.T, preferred_element_type=f32) + model.b2c.reshape(1, -1)
    y = jnp.maximum(y, 0.0)
    mu = jnp.mean(y, axis=-1, keepdims=True)
    var = jnp.mean((y - mu) ** 2, axis=-1, keepdims=True)
    y = (y - mu) * jax.lax.rsqrt(var + 1e-5)
    return (y * model.gammac.reshape(1, -1) + model.betac.reshape(1, -1)).astype(cd)


# -------------------------------------------------------------------- main ---
if __name__ == "__main__":
    key = jax.random.PRNGKey(0)
    kx, ke, ku, ks0, kd0, ks1, kd1 = jax.random.split(key, 7)

    # Small synthetic graph batch: 2 graphs, 8 nodes each, 150 edges each.
    n_node_feats = 8
    n_edge_feats_in = 6
    n_edge_feats_out = 8
    n_global_feats = 4
    latent_size = 32
    num_graphs = 2
    nodes_per_graph = 8
    edges_per_graph = 150
    num_nodes = num_graphs * nodes_per_graph             # 16
    num_edges = num_graphs * edges_per_graph             # 300 (not a tile multiple -> tests padding)

    x = jax.random.normal(kx, (num_nodes, n_node_feats), jnp.float32)
    edge_attr = jax.random.normal(ke, (num_edges, n_edge_feats_in), jnp.float32)
    u = jax.random.normal(ku, (num_graphs, n_global_feats), jnp.float32)
    batch = jnp.repeat(jnp.arange(num_graphs, dtype=jnp.int32), nodes_per_graph)

    # Edges grouped by graph (graph 0: nodes 0..7, graph 1: nodes 8..15).
    src0 = jax.random.randint(ks0, (edges_per_graph,), 0, nodes_per_graph)
    dst0 = jax.random.randint(kd0, (edges_per_graph,), 0, nodes_per_graph)
    src1 = jax.random.randint(ks1, (edges_per_graph,), 0, nodes_per_graph) + nodes_per_graph
    dst1 = jax.random.randint(kd1, (edges_per_graph,), 0, nodes_per_graph) + nodes_per_graph
    edge_index = jnp.stack([jnp.concatenate([src0, src1]),
                            jnp.concatenate([dst0, dst1])], axis=0).astype(jnp.int32)

    # tile_e=128 keeps a multi-step grid at this tiny test size; sweep 512-2048 at scale.
    model = EdgeModelPallas(n_edge_feats_in, n_edge_feats_out, n_node_feats,
                            n_global_feats, latent_size=latent_size,
                            tile_e=128, key=jax.random.PRNGKey(42))

    out = jax.block_until_ready(model(x, edge_index, edge_attr, u, batch))
    ref = reference_forward(model, x, edge_index, edge_attr, u, batch)

    assert out.shape == (num_edges, n_edge_feats_out)
    assert jnp.allclose(out.astype(jnp.float32), ref.astype(jnp.float32),
                        atol=2e-2, rtol=2e-2), "mismatch vs reference"
    print("KERNEL_OK")
</pallas_src>

<mosaic_0001>
module attributes {stable_mosaic.version = 11 : i64} {
  func.func @edge_mlp_kernel(%arg0: i32, %arg1: memref<3x128xi32, #tpu.memory_space<vmem>>, %arg2: memref<6x128xbf16, #tpu.memory_space<vmem>>, %arg3: memref<32x34xbf16, #tpu.memory_space<vmem>>, %arg4: memref<32x6xbf16, #tpu.memory_space<vmem>>, %arg5: memref<32x1xf32, #tpu.memory_space<vmem>>, %arg6: memref<8x32xbf16, #tpu.memory_space<vmem>>, %arg7: memref<8x1xf32, #tpu.memory_space<vmem>>, %arg8: memref<8x1xf32, #tpu.memory_space<vmem>>, %arg9: memref<8x1xf32, #tpu.memory_space<vmem>>, %arg10: memref<8x128xbf16, #tpu.memory_space<vmem>>) attributes {dimension_semantics = [#tpu.dimension_semantics<parallel>], iteration_bounds = array<i64: 3>, scalar_prefetch = 0 : i64, scratch_operands = 0 : i64, tpu.core_type = #tpu.core_type<tc>, window_params = [{transform_indices = @transform_0, window_bounds = array<i64: 3, 128>}, {transform_indices = @transform_1, window_bounds = array<i64: 6, 128>}, {pipeline_mode = #tpu.pipeline_mode<synchronous>, transform_indices = @transform_2, window_bounds = array<i64: 32, 34>}, {pipeline_mode = #tpu.pipeline_mode<synchronous>, transform_indices = @transform_3, window_bounds = array<i64: 32, 6>}, {pipeline_mode = #tpu.pipeline_mode<synchronous>, transform_indices = @transform_4, window_bounds = array<i64: 32, 1>}, {pipeline_mode = #tpu.pipeline_mode<synchronous>, transform_indices = @transform_5, window_bounds = array<i64: 8, 32>}, {pipeline_mode = #tpu.pipeline_mode<synchronous>, transform_indices = @transform_6, window_bounds = array<i64: 8, 1>}, {pipeline_mode = #tpu.pipeline_mode<synchronous>, transform_indices = @transform_7, window_bounds = array<i64: 8, 1>}, {pipeline_mode = #tpu.pipeline_mode<synchronous>, transform_indices = @transform_8, window_bounds = array<i64: 8, 1>}, {transform_indices = @transform_9, window_bounds = array<i64: 8, 128>}]} {
    %c0 = arith.constant 0 : index
    %c0_0 = arith.constant 0 : index
    %0 = vector.load %arg1[%c0, %c0_0] : memref<3x128xi32, #tpu.memory_space<vmem>>, vector<3x128xi32>
    %1 = vector.extract_strided_slice %0 {offsets = [0, 0], sizes = [1, 128], strides = [1, 1]} : vector<3x128xi32> to vector<1x128xi32>
    %2 = vector.extract_strided_slice %0 {offsets = [1, 0], sizes = [1, 128], strides = [1, 1]} : vector<3x128xi32> to vector<1x128xi32>
    %3 = vector.extract_strided_slice %0 {offsets = [2, 0], sizes = [1, 128], strides = [1, 1]} : vector<3x128xi32> to vector<1x128xi32>
    %4 = tpu.iota {dimensions = array<i32: 0>} : vector<34x128xi32>
    %5 = vector.broadcast %1 : vector<1x128xi32> to vector<34x128xi32>
    %6 = arith.cmpi eq, %4, %5 : vector<34x128xi32>
    %c16_i32 = arith.constant 16 : i32
    %7 = vector.broadcast %c16_i32 : i32 to vector<1x128xi32>
    %8 = arith.addi %2, %7 : vector<1x128xi32>
    %9 = vector.broadcast %8 : vector<1x128xi32> to vector<34x128xi32>
    %10 = arith.cmpi eq, %4, %9 : vector<34x128xi32>
    %11 = arith.ori %6, %10 : vector<34x128xi1>
    %c32_i32 = arith.constant 32 : i32
    %12 = vector.broadcast %c32_i32 : i32 to vector<1x128xi32>
    %13 = arith.addi %3, %12 : vector<1x128xi32>
    %14 = vector.broadcast %13 : vector<1x128xi32> to vector<34x128xi32>
    %15 = arith.cmpi eq, %4, %14 : vector<34x128xi32>
    %16 = arith.ori %11, %15 : vector<34x128xi1>
    %cst = arith.constant 1.000000e+00 : f32
    %cst_1 = arith.constant 0.000000e+00 : f32
    %17 = vector.broadcast %cst : f32 to vector<34x128xf32>
    %18 = vector.broadcast %cst_1 : f32 to vector<34x128xf32>
    %19 = arith.select %16, %17, %18 : vector<34x128xi1>, vector<34x128xf32>
    %20 = arith.truncf %19 : vector<34x128xf32> to vector<34x128xbf16>
    %c0_2 = arith.constant 0 : index
    %c0_3 = arith.constant 0 : index
    %21 = vector.load %arg3[%c0_2, %c0_3] : memref<32x34xbf16, #tpu.memory_space<vmem>>, vector<32x34xbf16>
    %cst_4 = arith.constant dense<0.000000e+00> : vector<32x128xf32>
    %22 = tpu.matmul %21, %20, %cst_4 {dimension_numbers = #tpu.dot_dimension_numbers<[1], [0], [0], [1], [0, 0, 1, 1], [], []>} : vector<32x34xbf16>, vector<34x128xbf16>, vector<32x128xf32> -> vector<32x128xf32>
    %c0_5 = arith.constant 0 : index
    %c0_6 = arith.constant 0 : index
    %23 = vector.load %arg4[%c0_5, %c0_6] : memref<32x6xbf16, #tpu.memory_space<vmem>>, vector<32x6xbf16>
    %c0_7 = arith.constant 0 : index
    %c0_8 = arith.constant 0 : index
    %24 = vector.load %arg2[%c0_7, %c0_8] : memref<6x128xbf16, #tpu.memory_space<vmem>>, vector<6x128xbf16>
    %cst_9 = arith.constant dense<0.000000e+00> : vector<32x128xf32>
    %25 = tpu.matmul %23, %24, %cst_9 {dimension_numbers = #tpu.dot_dimension_numbers<[1], [0], [0], [1], [0, 0, 1, 1], [], []>} : vector<32x6xbf16>, vector<6x128xbf16>, vector<32x128xf32> -> vector<32x128xf32>
    %26 = arith.addf %22, %25 : vector<32x128xf32>
    %c0_10 = arith.constant 0 : index
    %c0_11 = arith.constant 0 : index
    %27 = vector.load %arg5[%c0_10, %c0_11] : memref<32x1xf32, #tpu.memory_space<vmem>>, vector<32x1xf32>
    %28 = vector.broadcast %27 : vector<32x1xf32> to vector<32x128xf32>
    %29 = arith.addf %26, %28 : vector<32x128xf32>
    %cst_12 = arith.constant 0.000000e+00 : f32
    %30 = vector.broadcast %cst_12 : f32 to vector<32x128xf32>
    %31 = arith.maximumf %29, %30 : vector<32x128xf32>
    %32 = arith.truncf %31 : vector<32x128xf32> to vector<32x128xbf16>
    %c0_13 = arith.constant 0 : index
    %c0_14 = arith.constant 0 : index
    %33 = vector.load %arg6[%c0_13, %c0_14] : memref<8x32xbf16, #tpu.memory_space<vmem>>, vector<8x32xbf16>
    %cst_15 = arith.constant dense<0.000000e+00> : vector<8x128xf32>
    %34 = tpu.matmul %33, %32, %cst_15 {dimension_numbers = #tpu.dot_dimension_numbers<[1], [0], [0], [1], [0, 0, 1, 1], [], []>} : vector<8x32xbf16>, vector<32x128xbf16>, vector<8x128xf32> -> vector<8x128xf32>
    %c0_16 = arith.constant 0 : index
    %c0_17 = arith.constant 0 : index
    %35 = vector.load %arg7[%c0_16, %c0_17] : memref<8x1xf32, #tpu.memory_space<vmem>>, vector<8x1xf32>
    %36 = vector.broadcast %35 : vector<8x1xf32> to vector<8x128xf32>
    %37 = arith.addf %34, %36 : vector<8x128xf32>
    %cst_18 = arith.constant 0.000000e+00 : f32
    %38 = vector.broadcast %cst_18 : f32 to vector<8x128xf32>
    %39 = arith.maximumf %37, %38 : vector<8x128xf32>
    %cst_19 = arith.constant dense<0.000000e+00> : vector<128xf32>
    %40 = vector.multi_reduction <add>, %39, %cst_19 [0] : vector<8x128xf32> to vector<128xf32>
    %41 = vector.shape_cast %40 : vector<128xf32> to vector<1x128xf32>
    %cst_20 = arith.constant 8.000000e+00 : f32
    %42 = vector.broadcast %cst_20 : f32 to vector<1x128xf32>
    %43 = arith.divf %41, %42 : vector<1x128xf32>
    %44 = vector.broadcast %43 : vector<1x128xf32> to vector<8x128xf32>
    %45 = arith.subf %39, %44 : vector<8x128xf32>
    %46 = vector.broadcast %43 : vector<1x128xf32> to vector<8x128xf32>
    %47 = arith.subf %39, %46 : vector<8x128xf32>
    %48 = arith.mulf %45, %47 : vector<8x128xf32>
    %cst_21 = arith.constant dense<0.000000e+00> : vector<128xf32>
    %49 = vector.multi_reduction <add>, %48, %cst_21 [0] : vector<8x128xf32> to vector<128xf32>
    %50 = vector.shape_cast %49 : vector<128xf32> to vector<1x128xf32>
    %cst_22 = arith.constant 8.000000e+00 : f32
    %51 = vector.broadcast %cst_22 : f32 to vector<1x128xf32>
    %52 = arith.divf %50, %51 : vector<1x128xf32>
    %53 = vector.broadcast %43 : vector<1x128xf32> to vector<8x128xf32>
    %54 = arith.subf %39, %53 : vector<8x128xf32>
    %cst_23 = arith.constant 9.99999974E-6 : f32
    %55 = vector.broadcast %cst_23 : f32 to vector<1x128xf32>
    %56 = arith.addf %52, %55 : vector<1x128xf32>
    %57 = math.rsqrt %56 : vector<1x128xf32>
    %58 = vector.broadcast %57 : vector<1x128xf32> to vector<8x128xf32>
    %59 = arith.mulf %54, %58 : vector<8x128xf32>
    %c0_24 = arith.constant 0 : index
    %c0_25 = arith.constant 0 : index
    %60 = vector.load %arg8[%c0_24, %c0_25] : memref<8x1xf32, #tpu.memory_space<vmem>>, vector<8x1xf32>
    %61 = vector.broadcast %60 : vector<8x1xf32> to vector<8x128xf32>
    %62 = arith.mulf %59, %61 : vector<8x128xf32>
    %c0_26 = arith.constant 0 : index
    %c0_27 = arith.constant 0 : index
    %63 = vector.load %arg9[%c0_26, %c0_27] : memref<8x1xf32, #tpu.memory_space<vmem>>, vector<8x1xf32>
    %64 = vector.broadcast %63 : vector<8x1xf32> to vector<8x128xf32>
    %65 = arith.addf %62, %64 : vector<8x128xf32>
    %66 = arith.truncf %65 : vector<8x128xf32> to vector<8x128xbf16>
    %c0_28 = arith.constant 0 : index
    %c0_29 = arith.constant 0 : index
    %67 = vector.load %arg10[%c0_28, %c0_29] : memref<8x128xbf16, #tpu.memory_space<vmem>>, vector<8x128xbf16>
    tpu.vector_store %arg10[%c0_28, %c0_29], %66 {strides = array<i32>} : memref<8x128xbf16, #tpu.memory_space<vmem>>, vector<8x128xbf16>,
    return
  }
  func.func @transform_0(%arg0: i32) -> (i32, i32) {
    %c0_i32 = arith.constant 0 : i32
    %c0_i32_0 = arith.constant 0 : i32
    return %c0_i32, %arg0 : i32, i32
  }
  func.func @transform_1(%arg0: i32) -> (i32, i32) {
    %c0_i32 = arith.constant 0 : i32
    %c0_i32_0 = arith.constant 0 : i32
    return %c0_i32, %arg0 : i32, i32
  }
  func.func @transform_2(%arg0: i32) -> (i32, i32) {
    %c0_i32 = arith.constant 0 : i32
    %c0_i32_0 = arith.constant 0 : i32
    %c0_i32_1 = arith.constant 0 : i32
    return %c0_i32, %c0_i32_0 : i32, i32
  }
  func.func @transform_3(%arg0: i32) -> (i32, i32) {
    %c0_i32 = arith.constant 0 : i32
    %c0_i32_0 = arith.constant 0 : i32
    %c0_i32_1 = arith.constant 0 : i32
    return %c0_i32, %c0_i32_0 : i32, i32
  }
  func.func @transform_4(%arg0: i32) -> (i32, i32) {
    %c0_i32 = arith.constant 0 : i32
    %c0_i32_0 = arith.constant 0 : i32
    %c0_i32_1 = arith.constant 0 : i32
    return %c0_i32, %c0_i32_0 : i32, i32
  }
  func.func @transform_5(%arg0: i32) -> (i32, i32) {
    %c0_i32 = arith.constant 0 : i32
    %c0_i32_0 = arith.constant 0 : i32
    %c0_i32_1 = arith.constant 0 : i32
    return %c0_i32, %c0_i32_0 : i32, i32
  }
  func.func @transform_6(%arg0: i32) -> (i32, i32) {
    %c0_i32 = arith.constant 0 : i32
    %c0_i32_0 = arith.constant 0 : i32
    %c0_i32_1 = arith.constant 0 : i32
    return %c0_i32, %c0_i32_0 : i32, i32
  }
  func.func @transform_7(%arg0: i32) -> (i32, i32) {
    %c0_i32 = arith.constant 0 : i32
    %c0_i32_0 = arith.constant 0 : i32
    %c0_i32_1 = arith.constant 0 : i32
    return %c0_i32, %c0_i32_0 : i32, i32
  }
  func.func @transform_8(%arg0: i32) -> (i32, i32) {
    %c0_i32 = arith.constant 0 : i32
    %c0_i32_0 = arith.constant 0 : i32
    %c0_i32_1 = arith.constant 0 : i32
    return %c0_i32, %c0_i32_0 : i32, i32
  }
  func.func @transform_9(%arg0: i32) -> (i32, i32) {
    %c0_i32 = arith.constant 0 : i32
    %c0_i32_0 = arith.constant 0 : i32
    return %c0_i32, %arg0 : i32, i32
  }
}

</mosaic_0001>

<bundles_post_ra>
// kernel: edge_model_forward.1
= control target key start
LH: loop header
LB: loop body
LE: loop exit
PB: predicated region body
PF: predicated region fallthrough
CT: control target
= control target key end

     0   :  { %s778_s30 = smov 0   ;;  %s862_s0 = inlined_call_operand.vmem [shape: s32[3,384], index: 0, kind: input, shape index: {}]   ;;  %s863_s1 = inlined_call_operand.vmem [shape: bf16[6,384], index: 1, kind: input, shape index: {}]   ;;  %s864_s2 = inlined_call_operand.vmem [shape: bf16[32,34], index: 2, kind: input, shape index: {}]   ;;  %s865_s3 = inlined_call_operand.vmem [shape: bf16[32,6], index: 3, kind: input, shape index: {}]   ;;  %s866_s4 = inlined_call_operand.vmem [shape: f32[32,1], index: 4, kind: input, shape index: {}]   ;;  %s867_s5 = inlined_call_operand.vmem [shape: bf16[8,32], index: 5, kind: input, shape index: {}]   ;;  %s868_s6 = inlined_call_operand.vmem [shape: f32[8,1], index: 6, kind: input, shape index: {}]   ;;  %s869_s7 = inlined_call_operand.vmem [shape: f32[8,1], index: 7, kind: input, shape index: {}]   ;;  %s870_s8 = inlined_call_operand.vmem [shape: f32[8,1], index: 8, kind: input, shape index: {}]   ;;  %s871_s9 = inlined_call_operand.vmem [shape: bf16[8,384], index: 9, kind: output, shape index: {}]  }
   0x1 LB: > { %s655_s10 = sadd.s32 4294967295, %s722_s30   ;;  %p659_p0 = scmp.ge.s32.totalorder %s722_s30, 1  ;;  %s722_s30 = sphi %s778_s30, %s19_s30  }
   0x2   : > { %p295_p1 = scmp.lt.s32.totalorder %s722_s30, 4 }
   0x4   : > { %p296_p2 = pnand %p659_p0, %p295_p1 }
   0x5   : > { %p333_p3 = scmp.lt.s32.totalorder (!%p296_p2), %s655_s10, 2 }
   0x6   : > { %299 = sbr.rel (%p296_p2) target bundleno = 389 (0x185), region = 56 }
   0xb   : > { %v347_v0 = vlaneseq  ;;  %s877_s10 = smov (!%p333_p3, %s655_s10), 2  ;;  %v482_v2 = vld [vmem:[%s866_s4 + $0x10] sm:$0xff]  ;;  %v480_v3 = vld [vmem:[%s866_s4] sm:$0xff]  ;;  %v724_v4 = vmov 0   ;;  %vm417_vm0 = vcmask 1042432   ;;  %vm410_vm1 = vcmask 48128  }
   0xc   : > { %709 = vset.pattern.permute.xlu0 %v724_v4  ;;  %710 = vset.pattern.permute.xlu1 %v724_v4  ;;  %s794_s15 = sshll.u32 %s877_s10, 2  ;;  %v692_v13 = vld [vmem:[%s865_s3] sm:$0xff]  ;;  %v483_v17 = vld [vmem:[%s866_s4 + $0x18] sm:$0xff]  ;;  %v481_v18 = vld [vmem:[%s866_s4 + $0x8] sm:$0xff]  ;;  %v725_v20 = vmov 0.0   ;;  %vm457_vm12 = vcmask 1040384  }
   0xd   : > { %v786_v1 = vshrl.u32 %v347_v0, 7  ;;  %496 = vperm.xlu0 %709, %v482_v2   ;;  %486 = vperm.xlu1 %710, %v480_v3   ;;  %s336_s18 = scalar_lea.vmem %s862_s0, %s794_s15  ;;  %s340_s21 = scalar_lea.vmem %s863_s1, %s794_s15  ;;  %v581_v26 = vld [vmem:[%s870_s8] sm:$0xff]  ;;  %v726_v27 = vmov 1.0|1.0   ;;  %v693_v28 = vld [vmem:[%s865_s3 + $0x8] sm:$0xff]  ;;  %v727_v60 = vmov 8.0  }
   0xe   : > { %711 = vset.pattern.permute.xlu2 %v724_v4  ;;  %v346_v6 = vld [vmem:[%s336_s18] sm:$0x7]  ;;  %v691_v30 = vld [vmem:[%s864_s2 + $0x8] sm:$0xff]  ;;  %712 = vrcp.f32 %v727_v60  ;;  %s344_s25 = scalar_lea.vmem %s871_s9, %s794_s15 }
   0xf   : > { %v352_v5 = vadd.s32 32, %v786_v1  ;;  %v399_v7 = vld [vmem:[%s340_s21] sm:$0x7]  ;;  %v350_v8 = vadd.s32 16, %v786_v1  ;;  %v353_v9 = vperm.slane %v346_v6, 0  ;;  %v359_v10 = vadd.s32 16, %v346_v6 }
  0x10   : > { %v371_v11 = vadd.s32 32, %v346_v6  ;;  %v419_v12 = vsel %vm417_vm0, %v399_v7, 0  ;;  %v351_v14 = vadd.s32 24, %v786_v1  ;;  %v349_v19 = vadd.s32 8, %v786_v1  ;;  %v690_v29 = vld [vmem:[%s864_s2] sm:$0xff] }
  0x11   : > { %428 = vmatpush.bf16.msra.mxu0 %v419_v12  ;;  %v360_v15 = vperm.slane %v359_v10, 1  ;;  %vm358_vm2 = vcmp.eq.s32.totalorder %v352_v5, %v353_v9  ;;  %vm356_vm5 = vcmp.eq.s32.totalorder %v350_v8, %v353_v9  ;;  %v515_v33 = vld [vmem:[%s868_s6] sm:$0xff] }
  0x12   : > { %v372_v16 = vperm.slane %v371_v11, 2  ;;  %vm357_vm8 = vcmp.eq.s32.totalorder %v351_v14, %v353_v9  ;;  %518 = vperm.xlu2 %711, %v515_v33   ;;  %v574_v37 = vld [vmem:[%s869_s7] sm:$0xff] }
  0x13   : > { %vm365_vm3 = vcmp.eq.s32.totalorder %v352_v5, %v360_v15  ;;  %vm363_vm6 = vcmp.eq.s32.totalorder %v350_v8, %v360_v15  ;;  %vm364_vm9 = vcmp.eq.s32.totalorder %v351_v14, %v360_v15  ;;  %v514_v59 = vld [vmem:[%s867_s5] sm:$0xf] }
  0x14   : > { %671 = vmatmul.msk.bf16.vlgmr.msra.gmra.mxu0 %vm410_vm1, %v692_v13  ;;  %vm377_vm4 = vcmp.eq.s32.totalorder %v352_v5, %v372_v16  ;;  %vm370_vm7 = vmor %vm358_vm2, %vm365_vm3  ;;  %vm375_vm11 = vcmp.eq.s32.totalorder %v350_v8, %v372_v16  ;;  %vm376_vm14 = vcmp.eq.s32.totalorder %v351_v14, %v372_v16  ;;  %vm354_vm2 = vcmp.eq.s32.totalorder %v786_v1, %v353_v9  ;;  %v713_v61 = vpop.eup %712 }
  0x15   : > { %501 = vperm.xlu0 %709, %v483_v17   ;;  %vm382_vm10 = vmor %vm370_vm7, %vm377_vm4  ;;  %491 = vperm.xlu1 %710, %v481_v18   ;;  %vm361_vm3 = vcmp.eq.s32.totalorder %v786_v1, %v360_v15  ;;  %vm355_vm7 = vcmp.eq.s32.totalorder %v349_v19, %v353_v9  ;;  %v546_v62 = vmul.f32 8.0, %v713_v61 }
  0x16   : > { %v387_v21 = vsel %vm382_vm10, 1.0, %v725_v20  ;;  %vm368_vm13 = vmor %vm356_vm5, %vm363_vm6  ;;  %vm362_vm10 = vcmp.eq.s32.totalorder %v349_v19, %v360_v15  ;;  %vm373_vm6 = vcmp.eq.s32.totalorder %v786_v1, %v372_v16 }
  0x17   : > { %v390_v22 = vpack.c.bf16 %v387_v21, %v387_v21  ;;  %vm369_vm15 = vmor %vm357_vm8, %vm364_vm9  ;;  %vm374_vm9 = vcmp.eq.s32.totalorder %v349_v19, %v372_v16  ;;  %v547_v2 = vsub.f32 1.0, %v546_v62 }
  0x18   : > { %vm818_vm0 = vmor %vm368_vm13, %vm375_vm11 }
  0x19   : > { %v459_v24 = vsel %vm457_vm12, %v390_v22, 0  ;;  %vm824_vm4 = vmor %vm369_vm15, %vm376_vm14  ;;  %vm450_vm15 = vcmask 277504   ;;  %v548_v5 = vmul.f32 %v713_v61, %v547_v2 }
  0x1a   : > { %466 = vmatpush.bf16.msra.mxu1 %v459_v24  ;;  %694 = vmatpush.bf16.msra.mxu3 %v459_v24  ;;  %vm681_vm5 = vmpackc.low %vm824_vm4, %vm818_vm0  ;;  %vm550_vm0 = vweird.f32 %v713_v61 }
  0x1b   : > { %vm366_vm8 = vmor %vm354_vm2, %vm361_vm3  ;;  %577 = vperm.xlu2 %711, %v574_v37   ;;  %v549_v9 = vadd.f32 %v713_v61, %v548_v5 }
  0x1c   : > { %vm367_vm11 = vmor %vm355_vm7, %vm362_vm10 }
  0x1d   : > { %584 = vperm.xlu0 %709, %v581_v26   ;;  %vm378_vm12 = vmor %vm366_vm8, %vm373_vm6  ;;  %v551_v12 = vsel %vm550_vm0, %v713_v61, %v549_v9 }
  0x1e   : > { %682 = vmatpush.bf16.msk.msra.mxu1 %vm681_vm5, %v726_v27  ;;  %695 = vmatpush.bf16.msk.msra.mxu3 %vm681_vm5, %v726_v27  ;;  %vm379_vm13 = vmor %vm367_vm11, %vm374_vm9 }
  0x1f   : > { %vm683_vm14 = vmpackc.low %vm379_vm13, %vm378_vm12 }
  0x22   : > { %684 = vmatpush.bf16.msk.msra.mxu1 %vm683_vm14, %v726_v27  ;;  %696 = vmatpush.bf16.msk.msra.mxu3 %vm683_vm14, %v726_v27 }
  0x24   : > { %672 = vmatmul.msk.bf16.gmra.mxu0 %vm410_vm1, %v693_v28  ;;  %vm521_vm1 = vcmask 261120  }
  0x25   : > { %685 = vmatmul.msk.bf16.vlgmr.msra.gmra.mxu1 %vm450_vm15, %v690_v29  ;;  %686 = vmatmul.msk.bf16.vlgmr.msra.gmra.mxu3 %vm450_vm15, %v691_v30 }
  0x6c   : > { %v519_v63 = vpop.permute.xlu2 %518 }
  0x75   : > { %v578_v33 = vpop.permute.xlu2 %577 }
  0x7f   : > { %v487_v35 = vpop.permute.xlu1 %486  ;;  %v497_v38 = vpop.permute.xlu0 %496 }
  0x87   : > { %v492_v43 = vpop.permute.xlu1 %491  ;;  %v502_v49 = vpop.permute.xlu0 %501 }
  0x91   : > { %v430_v31 = vpop.f32.mrf.mxu0 }
  0x99   : > { %v432_v32 = vpop.f32.mrf.mxu0 }
  0xa1   : > { %v435_v36 = vpop.f32.mrf.mxu0 }
  0xa2   : > { %v470_v34 = vpop.f32.mrf.mxu1 }
  0xa3   : > { %v471_v46 = vadd.f32 %v470_v34, %v430_v31 }
  0xa5   : > { %v504_v52 = vadd.f32 %v487_v35, %v471_v46  ;;  %v585_v35 = vpop.permute.xlu0 %584 }
  0xa7   : > { %v508_v57 = vmax.f32 %v504_v52, 0.0 }
  0xa8   : > { %v475_v39 = vpop.f32.mrf.mxu3 }
  0xa9   : > { %v476_v41 = vadd.f32 %v475_v39, %v435_v36  ;;  %v437_v44 = vpop.f32.mrf.mxu0 }
  0xaa   : > { %v472_v40 = vpop.f32.mrf.mxu1 }
  0xab   : > { %v473_v42 = vadd.f32 %v472_v40, %v432_v32  ;;  %v506_v48 = vadd.f32 %v497_v38, %v476_v41 }
  0xad   : > { %v505_v50 = vadd.f32 %v492_v43, %v473_v42  ;;  %v510_v53 = vmax.f32 %v506_v48, 0.0 }
  0xaf   : > { %v509_v55 = vmax.f32 %v505_v50, 0.0 }
  0xb0   : > { %v477_v45 = vpop.f32.mrf.mxu3 }
  0xb1   : > { %v478_v47 = vadd.f32 %v477_v45, %v437_v44  ;;  %v512_v58 = vpack.c.bf16 %v509_v55, %v508_v57 }
  0xb3   : > { %v507_v51 = vadd.f32 %v502_v49, %v478_v47 }
  0xb5   : > { %v511_v54 = vmax.f32 %v507_v51, 0.0 }
  0xb7   : > { %v513_v56 = vpack.c.bf16 %v511_v54, %v510_v53 }
  0xb9   : > { %531 = vmatpush.bf16.msra.mxu2 %v513_v56 }
  0xbd   : > { %532 = vmatpush.bf16.msra.mxu2 %v512_v58 }
  0xc0   : > { %687 = vmatmul.msk.bf16.vlgmr.msra.gmra.mxu2 %vm521_vm1, %v514_v59 }
 0x143   : > { %v534_v0 = vpop.f32.mrf.mxu2 }
 0x144   : > { %v535_v1 = vadd.f32 %v534_v0, %v519_v63 }
 0x146   : > { %v538_v3 = vmax.f32 %v535_v1, 0.0 }
 0x148   : > { %v539_v4 = vrot.slane %v538_v3, 4 }
 0x14a   : > { %v540_v6 = vadd.f32 %v539_v4, %v538_v3 }
 0x14b   : > { %v536_v7 = vpop.f32.mrf.mxu2 }
 0x14c   : > { %v541_v8 = vrot.slane %v540_v6, 2 }
 0x14e   : > { %v542_v10 = vadd.f32 %v541_v8, %v540_v6 }
 0x150   : > { %v543_v11 = vrot.slane %v542_v10, 1 }
 0x152   : > { %v544_v13 = vadd.f32 %v543_v11, %v542_v10 }
 0x154   : > { %v552_v14 = vmul.f32 %v551_v12, %v544_v13 }
 0x156   : > { %v553_v15 = vsub.f32 %v538_v3, %v552_v14 }
 0x158   : > { %v554_v16 = vmul.f32 %v553_v15, %v553_v15 }
 0x15a   : > { %v555_v17 = vrot.slane %v554_v16, 4 }
 0x15c   : > { %v556_v18 = vadd.f32 %v555_v17, %v554_v16 }
 0x15e   : > { %v557_v19 = vrot.slane %v556_v18, 2 }
 0x160   : > { %v558_v20 = vadd.f32 %v557_v19, %v556_v18 }
 0x162   : > { %v559_v21 = vrot.slane %v558_v20, 1 }
 0x164   : > { %v560_v22 = vadd.f32 %v559_v21, %v558_v20 }
 0x166   : > { %v561_v23 = vmul.f32 %v560_v22, %v551_v12 }
 0x168   : > { %v562_v24 = vadd.f32 1e-05, %v561_v23 }
 0x16a   : > { %714 = vrsqrt.f32 %v562_v24  ;;  %vm569_vm3 = vweird.f32 %v562_v24 }
 0x170   : > { %v715_v25 = vpop.eup %714 }
 0x171   : > { %v564_v26 = vmul.f32 %v715_v25, %v562_v24  ;;  %vm570_vm2 = vweird.f32 %v715_v25 }
 0x172   : > { %vm571_vm4 = vmor %vm569_vm3, %vm570_vm2 }
 0x173   : > { %v565_v27 = vmul.f32 %v715_v25, %v564_v26 }
 0x175   : > { %v566_v28 = vmul.f32 0.5, %v565_v27 }
 0x177   : > { %v567_v29 = vsub.f32 1.5, %v566_v28 }
 0x179   : > { %v568_v30 = vmul.f32 %v715_v25, %v567_v29 }
 0x17b   : > { %v572_v31 = vsel %vm571_vm4, %v715_v25, %v568_v30 }
 0x17c   : > { %v573_v32 = vmul.f32 %v572_v31, %v553_v15 }
 0x17e   : > { %v580_v34 = vmul.f32 %v578_v33, %v573_v32 }
 0x180   : > { %v587_v36 = vadd.f32 %v585_v35, %v580_v34 }
 0x182   : > { %v588_v37 = vpack.c.bf16 %v587_v36, %v587_v36 }
 0x184   : > { %589 = vst [vmem:[%s344_s25] sm:$0xf] %v588_v37 }
 0x185 PF: > { %s19_s30 = sadd.s32 1, %s722_s30  }
 0x186   : > { %p16_p4 = scmp.ge.s32.totalorder %s19_s30, 5  }
 0x188   :  { %18 = sbr.rel (!%p16_p4) target bundleno = 1 (0x1), region = 89 }

</bundles_post_ra>
